<compile_context>
chip_gen: v7x
topology: tpu7x:2x2x1
jax: 0.10.0
libtpu: 0.0.40
codegen_flags: <defaults>
</compile_context>

<pallas_src>
import numpy as np
import jax
import jax.numpy as jnp
from jax.experimental import pallas as pl
from jax.experimental.pallas import tpu as pltpu


LANES = 1024               # lane-dense view width: multiple of 128, even
_VMEM_LIMIT_BYTES = 32 << 20   # 1024-row f32 blocks double-buffered in+out = 16 MiB; safe on v5e/v6e/v7x


def _round_up(a: int, b: int) -> int:
    return ((a + b - 1) // b) * b


def _sublane_multiple(dtype) -> int:
    # f32 tiles are (8, 128); sub-32-bit dtypes pack along sublanes (16 for 2-byte, 32 for 1-byte).
    return 8 * (4 // jnp.dtype(dtype).itemsize)


def _max_block_rows(dtype) -> int:
    # Block bytes held constant across dtypes:
    #   v6e / v7x : 4 MiB blocks  (f32 -> 1024 rows)
    #   v5e / other: 2 MiB blocks (f32 -> 512 rows) -- safe under v5e's smaller default VMEM scope.
    try:
        kind = jax.devices()[0].device_kind.lower()
    except Exception:
        kind = ""
    base = 1024 if ("v6" in kind or "v7" in kind or "7x" in kind) else 512
    return base * (4 // jnp.dtype(dtype).itemsize)


def _choose_block_rows(rows: int, sub: int, max_rows: int) -> int:
    if rows <= sub:
        return rows  # single block covering the full (tiny) array; full-extent dims are allowed
    block = min(max_rows, (rows // sub) * sub)  # multiple of sub, <= rows
    if rows >= 2 * sub:
        # Guarantee >= 2 grid steps so the "parallel" axis can split across v7x's 2 TensorCores.
        block = min(block, _round_up(pl.cdiv(rows, 2), sub))
    return block


def _unorm_gps_kernel(x_ref, o_ref):
    # Pure VPU elementwise hot path: clamp + per-lane scale multiply (kernel is HBM-bound;
    # the iota/select scale construction sits in VALU slack).
    x = jnp.clip(x_ref[...], -1.0, 1.0)
    # Even lanes hold latitude (scale pi/2), odd lanes hold longitude (scale pi).
    lane = jax.lax.broadcasted_iota(jnp.int32, (1, x.shape[-1]), 1)
    scale = jnp.where((lane & 1) == 0, np.pi * 0.5, np.pi).astype(x.dtype)
    o_ref[...] = x * scale


def unorm_gps(x: jax.Array) -> jax.Array:
    """Unnormalize lat/long from [-1, 1] to radians via a lane-dense Pallas kernel."""
    assert x.ndim == 2 and x.shape[-1] == 2, "expected (B, 2) lat/long input"
    dtype = x.dtype
    n = x.shape[0] * 2  # flat element count (row-major: lat, lon, lat, lon, ...)
    sub = _sublane_multiple(dtype)

    flat = x.reshape(-1)
    if n % LANES == 0:
        rows = n // LANES
        padded_n = n                      # no pad, no output slice: ragged blocks handle the rest
    else:
        # Pad only in the non-aligned case, and only up to one sublane stripe (<= 32 KiB f32).
        rows = _round_up(pl.cdiv(n, LANES), sub)
        padded_n = rows * LANES
        flat = jnp.pad(flat, (0, padded_n - n))

    x2d = flat.reshape(rows, LANES)

    block_rows = _choose_block_rows(rows, sub, _max_block_rows(dtype))
    grid = pl.cdiv(rows, block_rows)      # ragged final block is masked by Pallas

    out2d = pl.pallas_call(
        _unorm_gps_kernel,
        out_shape=jax.ShapeDtypeStruct((rows, LANES), dtype),
        grid=(grid,),
        in_specs=[pl.BlockSpec((block_rows, LANES), lambda i: (i, 0))],
        out_specs=pl.BlockSpec((block_rows, LANES), lambda i: (i, 0)),
        compiler_params=pltpu.CompilerParams(
            dimension_semantics=("parallel",),   # shards grid across 2 TCs on v7x; no-op on v5e/v6e
            vmem_limit_bytes=_VMEM_LIMIT_BYTES,
        ),
    )(x2d)

    out_flat = out2d.reshape(-1)
    if padded_n != n:
        out_flat = out_flat[:n]
    return out_flat.reshape(x.shape)


def unorm_gps_ref(x: jax.Array) -> jax.Array:
    """Pure-JAX reference mirroring the PyTorch forward (use when fusion with neighbors wins)."""
    scale = jnp.asarray([[np.pi * 0.5, np.pi]], dtype=x.dtype)
    return jnp.clip(x, -1.0, 1.0) * scale


if __name__ == "__main__":
    key = jax.random.PRNGKey(0)

    # Small batch; values span beyond [-1, 1] so the clamp path is exercised.
    x_small = jax.random.uniform(key, (8, 2), dtype=jnp.float32, minval=-2.0, maxval=2.0)
    y_small = jax.block_until_ready(unorm_gps(x_small))
    np.testing.assert_allclose(
        np.asarray(y_small), np.asarray(unorm_gps_ref(x_small)), rtol=1e-6, atol=1e-6
    )

    # Odd-sized batch exercises the tail-padding / output-slicing path.
    k1 = jax.random.PRNGKey(1)
    x_odd = jax.random.uniform(k1, (777, 2), dtype=jnp.float32, minval=-3.0, maxval=3.0)
    y_odd = jax.block_until_ready(unorm_gps(x_odd))
    np.testing.assert_allclose(
        np.asarray(y_odd), np.asarray(unorm_gps_ref(x_odd)), rtol=1e-6, atol=1e-6
    )

    # LANES-aligned batch exercises the zero-copy (no pad / no slice) path, grid = 1.
    k2 = jax.random.PRNGKey(2)
    x_aln = jax.random.uniform(k2, (2048, 2), dtype=jnp.float32, minval=-2.0, maxval=2.0)
    y_aln = jax.block_until_ready(unorm_gps(x_aln))
    np.testing.assert_allclose(
        np.asarray(y_aln), np.asarray(unorm_gps_ref(x_aln)), rtol=1e-6, atol=1e-6
    )

    # Larger batch exercises grid >= 2 (megacore split) and a ragged final block.
    k3 = jax.random.PRNGKey(3)
    x_big = jax.random.uniform(k3, (9000, 2), dtype=jnp.float32, minval=-3.0, maxval=3.0)
    y_big = jax.block_until_ready(unorm_gps(x_big))
    np.testing.assert_allclose(
        np.asarray(y_big), np.asarray(unorm_gps_ref(x_big)), rtol=1e-6, atol=1e-6
    )

    # bf16 exercises the dtype-aware sublane rounding (16-row packing tiles).
    k4 = jax.random.PRNGKey(4)
    x_bf = jax.random.uniform(k4, (300, 2), dtype=jnp.bfloat16, minval=-2.0, maxval=2.0)
    y_bf = jax.block_until_ready(unorm_gps(x_bf))
    np.testing.assert_allclose(
        np.asarray(y_bf, dtype=np.float32),
        np.asarray(unorm_gps_ref(x_bf), dtype=np.float32),
        rtol=1e-2, atol=1e-2,
    )

    print("KERNEL_OK")
</pallas_src>

<mosaic_0001>
module attributes {stable_mosaic.version = 11 : i64} {
  func.func @_unorm_gps_kernel(%arg0: i32, %arg1: memref<8x1024xf32, #tpu.memory_space<vmem>>, %arg2: memref<8x1024xf32, #tpu.memory_space<vmem>>) attributes {dimension_semantics = [#tpu.dimension_semantics<parallel>], iteration_bounds = array<i64: 1>, scalar_prefetch = 0 : i64, scratch_operands = 0 : i64, tpu.core_type = #tpu.core_type<tc>, window_params = [{transform_indices = @transform_0, window_bounds = array<i64: 8, 1024>}, {transform_indices = @transform_1, window_bounds = array<i64: 8, 1024>}]} {
    %c0 = arith.constant 0 : index
    %c0_0 = arith.constant 0 : index
    %0 = vector.load %arg1[%c0, %c0_0] : memref<8x1024xf32, #tpu.memory_space<vmem>>, vector<8x1024xf32>
    %cst = arith.constant -1.000000e+00 : f32
    %cst_1 = arith.constant 1.000000e+00 : f32
    %1 = vector.broadcast %cst : f32 to vector<8x1024xf32>
    %2 = arith.maximumf %1, %0 : vector<8x1024xf32>
    %3 = vector.broadcast %cst_1 : f32 to vector<8x1024xf32>
    %4 = arith.minimumf %3, %2 : vector<8x1024xf32>
    %5 = tpu.iota {dimensions = array<i32: 1>} : vector<1x1024xi32>
    %c1_i32 = arith.constant 1 : i32
    %6 = vector.broadcast %c1_i32 : i32 to vector<1x1024xi32>
    %7 = arith.andi %5, %6 : vector<1x1024xi32>
    %c0_i32 = arith.constant 0 : i32
    %8 = vector.broadcast %c0_i32 : i32 to vector<1x1024xi32>
    %9 = arith.cmpi eq, %7, %8 : vector<1x1024xi32>
    %cst_2 = arith.constant 1.57079637 : f32
    %cst_3 = arith.constant 3.14159274 : f32
    %10 = vector.broadcast %cst_2 : f32 to vector<1x1024xf32>
    %11 = vector.broadcast %cst_3 : f32 to vector<1x1024xf32>
    %12 = arith.select %9, %10, %11 : vector<1x1024xi1>, vector<1x1024xf32>
    %13 = vector.broadcast %12 : vector<1x1024xf32> to vector<8x1024xf32>
    %14 = arith.mulf %4, %13 : vector<8x1024xf32>
    %c0_4 = arith.constant 0 : index
    %c0_5 = arith.constant 0 : index
    %15 = vector.load %arg2[%c0_4, %c0_5] : memref<8x1024xf32, #tpu.memory_space<vmem>>, vector<8x1024xf32>
    tpu.vector_store %arg2[%c0_4, %c0_5], %14 {strides = array<i32>} : memref<8x1024xf32, #tpu.memory_space<vmem>>, vector<8x1024xf32>,
    return
  }
  func.func @transform_0(%arg0: i32) -> (i32, i32) {
    %c0_i32 = arith.constant 0 : i32
    %c0_i32_0 = arith.constant 0 : i32
    return %arg0, %c0_i32 : i32, i32
  }
  func.func @transform_1(%arg0: i32) -> (i32, i32) {
    %c0_i32 = arith.constant 0 : i32
    %c0_i32_0 = arith.constant 0 : i32
    return %arg0, %c0_i32 : i32, i32
  }
}

</mosaic_0001>

<bundles_post_ra>
// kernel: tpu_custom_call.1
= control target key start
LH: loop header
LB: loop body
LE: loop exit
PB: predicated region body
PF: predicated region fallthrough
CT: control target
= control target key end

     0   :  { %6 = vsyncpa [#allocation3], 0  ;;  %s205_s0 = inlined_call_operand.hbm [shape: f32[8,1024], index: 0, kind: input, shape index: {}]   ;;  %s206_s1 = inlined_call_operand.hbm [shape: f32[8,1024], index: 1, kind: output, shape index: {}]  }
   0x1   :  { %7 = vsyncpa [#allocation4], 0  ;;  %s168_s6 = smov [#allocation2]   ;;  %s120_s10 = scalar_lea.hbm %s205_s0, 1024 }
   0x2   :  { %s14_s7 = sshll.u32 %s168_s6, 4  ;;  %p121_p0 = scmp.ne.s32.totalorder %s205_s0, %s120_s10  ;;  %s15_s7 = int_to_ptr.vmem [resolvable:$true] %s14_s7 }
   0x3   :  { %p124_p1 = scmp.lt.u32.totalorder %s120_s10, %s205_s0 }
   0x5   :  { %p126_p2 = pnand %p124_p1, %p121_p0 }
   0x7   :  { %129 = shalt.err (!%p126_p2)
}
   0x8   :  { %s130_s15 = scalar_lea.vmem %s15_s7, 1024  ;;  %p135_p4 = scmp.lt.s32.totalorder %s15_s7, %s15_s7 }
   0x9   :  { %p131_p3 = scmp.ne.s32.totalorder %s15_s7, %s130_s15  ;;  %p136_p5 = scmp.lt.s32.totalorder %s130_s15, %s130_s15 }
   0xb   :  { %p137_p6 = por %p136_p5, %p135_p4 }
   0xd   :  { %p138_p7 = pnand %p137_p6, %p131_p3 }
   0xf   :  { %141 = shalt.err (!%p138_p7)
}
  0x10   :  { %17 = dma.hbm_to_vmem [thread:$0]  %s205_s0, 1024, %s15_s7, [#allocation3]  }
  0x11   :  { %164 = dma.done.wait [#allocation3], 1024  }
  0x12   :  { %165 = vsyncadd [#allocation3], 4294966272  ;;  %v45_v0 = vlaneseq  ;;  %v21_v13 = vld [vmem:[#allocation2] sm:$0xff]  ;;  %v169_v14 = vmov 3.1415927   ;;  %v22_v16 = vld [vmem:[#allocation2 + $0x8] sm:$0xff] }
  0x13   :  { %v23_v17 = vld [vmem:[#allocation2 + $0x10] sm:$0xff]  ;;  %v109_v19 = vclamps-f32 %v21_v13, 1.0  ;;  %v110_v20 = vclamps-f32 %v22_v16, 1.0  ;;  %v24_v22 = vld [vmem:[#allocation2 + $0x18] sm:$0xff]  ;;  %v25_v23 = vld [vmem:[#allocation2 + $0x20] sm:$0xff]  ;;  %s170_s0 = smov [#allocation5]  }
  0x14   :  { %v46_v1 = vand.u32 127, %v45_v0  ;;  %v111_v21 = vclamps-f32 %v23_v17, 1.0  ;;  %v112_v25 = vclamps-f32 %v24_v22, 1.0  ;;  %v26_v26 = vld [vmem:[#allocation2 + $0x28] sm:$0xff]  ;;  %v27_v31 = vld [vmem:[#allocation2 + $0x30] sm:$0xff]  ;;  %v28_v32 = vld [vmem:[#allocation2 + $0x38] sm:$0xff] }
  0x15   :  { %v113_v35 = vclamps-f32 %v25_v23, 1.0  ;;  %v114_v37 = vclamps-f32 %v26_v26, 1.0  ;;  %v115_v39 = vclamps-f32 %v27_v31, 1.0  ;;  %v116_v42 = vclamps-f32 %v28_v32, 1.0  ;;  %s100_s18 = sshll.u32 %s170_s0, 4  ;;  %s101_s18 = int_to_ptr.vmem [resolvable:$true] %s100_s18 }
  0x16   :  { %v54_v2 = vand.u32 1, %v46_v1  ;;  %v47_v3 = vadd.s32 128, %v46_v1  ;;  %v48_v4 = vadd.s32 256, %v46_v1  ;;  %v49_v5 = vadd.s32 384, %v46_v1  ;;  %s142_s19 = scalar_lea.vmem %s101_s18, 1024  ;;  %p147_p9 = scmp.lt.s32.totalorder %s101_s18, %s101_s18 }
  0x17   :  { %v50_v6 = vadd.s32 512, %v46_v1  ;;  %v51_v7 = vadd.s32 640, %v46_v1  ;;  %v52_v8 = vadd.s32 768, %v46_v1  ;;  %v53_v9 = vadd.s32 896, %v46_v1  ;;  %p143_p8 = scmp.ne.s32.totalorder %s101_s18, %s142_s19  ;;  %p148_p10 = scmp.lt.s32.totalorder %s142_s19, %s142_s19 }
  0x18   :  { %vm62_vm0 = vcmp.eq.s32.totalorder %v54_v2, 0  ;;  %v55_v10 = vand.u32 1, %v47_v3  ;;  %v56_v11 = vand.u32 1, %v48_v4  ;;  %v57_v12 = vand.u32 1, %v49_v5 }
  0x19   :  { %v70_v15 = vsel %vm62_vm0, 1.5707964, %v169_v14  ;;  %v58_v18 = vand.u32 1, %v50_v6  ;;  %v59_v38 = vand.u32 1, %v51_v7  ;;  %v60_v41 = vand.u32 1, %v52_v8  ;;  %p149_p11 = por %p148_p10, %p147_p9 }
  0x1a   :  { %vm63_vm1 = vcmp.eq.s32.totalorder %v55_v10, 0  ;;  %vm64_vm2 = vcmp.eq.s32.totalorder %v56_v11, 0  ;;  %vm65_vm3 = vcmp.eq.s32.totalorder %v57_v12, 0  ;;  %v78_v27 = vmul.f32 %v109_v19, %v70_v15 }
  0x1b   :  { %v71_v24 = vsel %vm63_vm1, 1.5707964, %v169_v14  ;;  %v72_v29 = vsel %vm64_vm2, 1.5707964, %v169_v14  ;;  %v73_v30 = vsel %vm65_vm3, 1.5707964, %v169_v14  ;;  %p150_p12 = pnand %p149_p11, %p143_p8 }
  0x1c   :  { %v79_v28 = vmul.f32 %v110_v20, %v71_v24  ;;  %v80_v33 = vmul.f32 %v111_v21, %v72_v29  ;;  %v81_v34 = vmul.f32 %v112_v25, %v73_v30  ;;  %vm66_vm4 = vcmp.eq.s32.totalorder %v58_v18, 0  ;;  %86 = vst [vmem:[#allocation5] sm:$0xff] %v78_v27 }
  0x1d   :  { %v74_v36 = vsel %vm66_vm4, 1.5707964, %v169_v14  ;;  %v61_v43 = vand.u32 1, %v53_v9  ;;  %vm67_vm5 = vcmp.eq.s32.totalorder %v59_v38, 0  ;;  %vm68_vm6 = vcmp.eq.s32.totalorder %v60_v41, 0 }
  0x1e   :  { %87 = vst [vmem:[#allocation5 + $0x8] sm:$0xff] %v79_v28  ;;  %88 = vst [vmem:[#allocation5 + $0x10] sm:$0xff] %v80_v33  ;;  %v82_v40 = vmul.f32 %v113_v35, %v74_v36  ;;  %v75_v44 = vsel %vm67_vm5, 1.5707964, %v169_v14  ;;  %v76_v46 = vsel %vm68_vm6, 1.5707964, %v169_v14 }
  0x1f   :  { %89 = vst [vmem:[#allocation5 + $0x18] sm:$0xff] %v81_v34  ;;  %vm69_vm7 = vcmp.eq.s32.totalorder %v61_v43, 0  ;;  %v83_v45 = vmul.f32 %v114_v37, %v75_v44  ;;  %v84_v48 = vmul.f32 %v115_v39, %v76_v46 }
  0x20   :  { %90 = vst [vmem:[#allocation5 + $0x20] sm:$0xff] %v82_v40  ;;  %v77_v47 = vsel %vm69_vm7, 1.5707964, %v169_v14 }
  0x21   :  { %v85_v49 = vmul.f32 %v116_v42, %v77_v47  ;;  %91 = vst [vmem:[#allocation5 + $0x28] sm:$0xff] %v83_v45  ;;  %92 = vst [vmem:[#allocation5 + $0x30] sm:$0xff] %v84_v48 }
  0x23   :  { %93 = vst [vmem:[#allocation5 + $0x38] sm:$0xff] %v85_v49 }
  0x24   :  { %153 = shalt.err (!%p150_p12)
}
  0x25   :  { %s154_s22 = scalar_lea.hbm %s206_s1, 1024 }
  0x26   :  { %p155_p13 = scmp.ne.s32.totalorder %s206_s1, %s154_s22  ;;  %p158_p0 = scmp.lt.u32.totalorder %s154_s22, %s206_s1 }
  0x28   :  { %p160_p1 = pnand %p158_p0, %p155_p13 }
  0x2a   :  { %163 = shalt.err (!%p160_p1)
}
  0x2b   :  { %103 = dma.vmem_to_hbm [thread:$0]  %s101_s18, 1024, %s206_s1, [#allocation4]  }
  0x2c   :  { %166 = dma.done.wait [#allocation4], 1024  }
  0x2d   :  { %167 = vsyncadd [#allocation4], 4294966272 }
  0x2e   :  { %107 = vsyncpa [#allocation3], 1 }
  0x2f   :  { %108 = vsyncpa [#allocation4], 1 }

</bundles_post_ra>
